<compile_context>
chip_gen: v5e
topology: v5e:2x2
jax: 0.10.0
libtpu: 0.0.40
codegen_flags: <defaults>
</compile_context>

<pallas_src>
import math

import jax
import jax.numpy as jnp
from jax.experimental import pallas as pl
from jax.experimental.pallas import tpu as pltpu


def _round_up(a, b):
    return ((a + b - 1) // b) * b


def _sublane(dtype):
    # Minimum second-to-last-dim multiple for this dtype (8 f32, 16 bf16, 32 int8).
    return 8 * max(1, 4 // jnp.dtype(dtype).itemsize)


def _make_kernel(*, K, TL, C_in, stride, dilation, needs_halo, has_bias, use_xcat):
    """Grid = (B, L_tiles). Each step computes one (TL, C_out_pad) output tile."""

    def kernel(*refs):
        i = 0
        a_ref = refs[i]; i += 1                      # (1, TL, stride*C_in) main rows
        h_ref = None
        if needs_halo:
            h_ref = refs[i]; i += 1                  # (1, H,  stride*C_in) halo rows
        w_ref = refs[i]; i += 1                      # (K*C_in, C_out_pad)
        b_ref = None
        if has_bias:
            b_ref = refs[i]; i += 1                  # (1, C_out_pad) float32
        o_ref = refs[i]; i += 1                      # (1, TL, C_out_pad)
        xcat_ref = refs[i] if use_xcat else None     # (TL, K*C_in) im2col scratch

        if use_xcat:
            # Build the im2col LHS straight from the input block(s): one store per
            # element, no window staging.  A single dot then keeps all K-tap
            # accumulation inside the MXU f32 accumulators.
            for k in range(K):                       # K is static -> unrolled
                off = k * dilation
                p, q = off // stride, off % stride   # polyphase row shift / phase
                col = slice(q * C_in, (q + 1) * C_in)
                dst = slice(k * C_in, (k + 1) * C_in)
                if p == 0:
                    xcat_ref[:, dst] = a_ref[0, :, col]
                elif p < TL:
                    xcat_ref[0:TL - p, dst] = a_ref[0, p:TL, col]
                    xcat_ref[TL - p:TL, dst] = h_ref[0, 0:p, col]
                else:  # p == TL (degenerate tiny-tile case, H == TL)
                    xcat_ref[:, dst] = h_ref[0, 0:TL, col]
            lhs = xcat_ref[...]
        else:
            # K == 1: single tap at phase 0 -> feed the MXU directly, no repack.
            lhs = a_ref[0] if stride == 1 else a_ref[0, :, 0:C_in]

        acc = jnp.dot(lhs, w_ref[...], preferred_element_type=jnp.float32)
        if has_bias:
            acc = acc + b_ref[...]                   # f32 bias on f32 accumulator
        o_ref[0] = acc.astype(o_ref.dtype)           # lane-dense (mult-of-128) store

    return kernel


def conv1d_pallas(x, weight, bias, *, stride=1, padding=0, dilation=1,
                  compute_dtype=None):
    """x: (B, L, C_in); weight: (C_out, C_in, K); bias: (C_out,) or None.

    Returns (B, L_out, C_out), matching
        nn.Conv1d(...)(x.transpose(1, 2)).transpose(1, 2)  in PyTorch.
    compute_dtype=jnp.bfloat16 gives ~2-3x faster MXU + half the DMA bytes
    (accumulation stays float32); default None keeps exact f32 semantics.
    """
    B, L, C_in = x.shape
    C_out, C_in_w, K = weight.shape
    assert C_in == C_in_w
    L_out = (L + 2 * padding - dilation * (K - 1) - 1) // stride + 1
    assert L_out > 0

    out_dtype = x.dtype
    cdt = jnp.dtype(compute_dtype) if compute_dtype is not None else jnp.dtype(x.dtype)
    in_item = cdt.itemsize
    out_item = jnp.dtype(out_dtype).itemsize
    sub = max(_sublane(cdt), _sublane(out_dtype))     # dtype-aware sublane multiple

    C_out_pad = _round_up(C_out, 128)                 # lane-dense output stores
    lane_w = stride * C_in                            # polyphase row width
    has_bias = bias is not None
    use_xcat = K > 1

    # Halo (in polyphase rows) needed past the TL-row main block by the last taps.
    p_max = ((K - 1) * dilation) // stride
    needs_halo = p_max > 0
    H = _round_up(p_max, sub) if needs_halo else 0
    gran = H if needs_halo else sub                   # TL granularity

    # ----- VMEM budgeting (honest accounting, derived from the chip) --------
    try:
        vmem_cap = int(pltpu.get_tpu_info().vmem_capacity_bytes)
    except Exception:
        vmem_cap = 64 * 1024 * 1024                   # conservative (v7x per-core)
    vmem_budget = min(int(vmem_cap * 0.45), 96 * 1024 * 1024)

    def _step_bytes(tl):
        b = 2 * tl * lane_w * in_item                          # main input (2-buf)
        b += 2 * H * lane_w * in_item                          # halo (2-buf)
        b += 2 * K * C_in * C_out_pad * in_item                # weights (assume 2-buf)
        b += (2 * C_out_pad * 4) if has_bias else 0            # bias
        b += 2 * tl * C_out_pad * out_item                     # output (2-buf)
        b += (tl * K * C_in * in_item) if use_xcat else 0      # im2col scratch
        b += 2 * tl * C_out_pad * 4                            # dot result + temps
        return b

    TL = min(_round_up(2048, gran), _round_up(L_out, gran))
    while TL > gran and _step_bytes(TL) > vmem_budget:
        TL = max(gran, _round_up(TL // 2, gran))
    nL = pl.cdiv(L_out, TL)
    TL = _round_up(pl.cdiv(L_out, nL), gran)          # balance tiles -> minimal tail pad
    L_out_pad = nL * TL

    vmem_limit = int(min(vmem_cap * 0.9,
                         max(2 * _step_bytes(TL), 16 * 1024 * 1024)))

    # ----- padded, polyphase-reshaped input: (B, R_ph, stride*C_in) ---------
    R_ph = max(nL * TL + H, pl.cdiv(L + padding, stride))
    R_total = R_ph * stride
    if cdt != x.dtype:
        x = x.astype(cdt)                             # cast before pad: half the bytes
    pad_r = R_total - L - padding
    if padding or pad_r:
        x = jnp.pad(x, ((0, 0), (padding, pad_r), (0, 0)))
    x_ph = x.reshape(B, R_ph, lane_w)                 # free row-major reshape

    # ----- weights / bias: fold K into one (K*C_in, C_out_pad) contraction --
    w_flat = jnp.transpose(weight, (2, 1, 0)).reshape(K * C_in, C_out)
    w_flat = jnp.pad(w_flat, ((0, 0), (0, C_out_pad - C_out))).astype(cdt)

    inputs = [x_ph]
    in_specs = [pl.BlockSpec((1, TL, lane_w), lambda b, j: (b, j, 0))]
    if needs_halo:
        hb = TL // H
        inputs.append(x_ph)
        in_specs.append(
            pl.BlockSpec((1, H, lane_w), lambda b, j: (b, (j + 1) * hb, 0)))
    inputs.append(w_flat)
    in_specs.append(pl.BlockSpec((K * C_in, C_out_pad), lambda b, j: (0, 0)))
    if has_bias:
        bias_arr = jnp.pad(bias.astype(jnp.float32),
                           (0, C_out_pad - C_out)).reshape(1, C_out_pad)
        inputs.append(bias_arr)
        in_specs.append(pl.BlockSpec((1, C_out_pad), lambda b, j: (0, 0)))

    scratch_shapes = [pltpu.VMEM((TL, K * C_in), cdt)] if use_xcat else []

    kernel = _make_kernel(K=K, TL=TL, C_in=C_in, stride=stride, dilation=dilation,
                          needs_halo=needs_halo, has_bias=has_bias,
                          use_xcat=use_xcat)

    out = pl.pallas_call(
        kernel,
        out_shape=jax.ShapeDtypeStruct((B, L_out_pad, C_out_pad), out_dtype),
        grid_spec=pltpu.PrefetchScalarGridSpec(
            num_scalar_prefetch=0,
            grid=(B, nL),
            in_specs=in_specs,
            out_specs=pl.BlockSpec((1, TL, C_out_pad), lambda b, j: (b, j, 0)),
            scratch_shapes=scratch_shapes,
        ),
        compiler_params=pltpu.CompilerParams(
            dimension_semantics=("parallel", "parallel"),
            vmem_limit_bytes=vmem_limit),
    )(*inputs)

    if L_out_pad == L_out and C_out_pad == C_out:
        return out                                    # no post-kernel slice pass
    return out[:, :L_out, :C_out]


class Conv1DPallas:
    """Mirror of the PyTorch Conv1D module (channels-last forward)."""

    def __init__(self, in_channels, out_channels, kernel_size=1, stride=1,
                 padding=0, dilation=1, bias=True, key=None,
                 compute_dtype=None):
        self.stride = stride
        self.padding = padding
        self.dilation = dilation
        # compute_dtype=jnp.bfloat16 recommended for speed (f32 accumulation kept).
        self.compute_dtype = compute_dtype
        if key is None:
            key = jax.random.PRNGKey(0)
        k_w, k_b = jax.random.split(key)
        # PyTorch nn.Conv1d default init: U(-bound, bound), bound = 1/sqrt(C_in*K)
        bound = 1.0 / math.sqrt(in_channels * kernel_size)
        self.weight = jax.random.uniform(
            k_w, (out_channels, in_channels, kernel_size),
            minval=-bound, maxval=bound, dtype=jnp.float32)
        self.bias = (
            jax.random.uniform(k_b, (out_channels,), minval=-bound,
                               maxval=bound, dtype=jnp.float32)
            if bias else None
        )

    def __call__(self, x):
        # x: (batch, length, in_channels) -> (batch, length_out, out_channels)
        return conv1d_pallas(
            x, self.weight, self.bias,
            stride=self.stride, padding=self.padding, dilation=self.dilation,
            compute_dtype=self.compute_dtype)


def _reference(x, weight, bias, stride, padding, dilation):
    # Pure-JAX reference matching nn.Conv1d on NCW layout.
    x_ncw = jnp.transpose(x, (0, 2, 1))
    y = jax.lax.conv_general_dilated(
        x_ncw, weight,
        window_strides=(stride,),
        padding=[(padding, padding)],
        rhs_dilation=(dilation,),
        dimension_numbers=("NCH", "OIH", "NCH"),
    )
    if bias is not None:
        y = y + bias[None, :, None]
    return jnp.transpose(y, (0, 2, 1))


def _check(y, y_ref, atol, rtol, tag):
    assert y.shape == y_ref.shape, (tag, y.shape, y_ref.shape)
    err = float(jnp.max(jnp.abs(y - y_ref)))
    assert jnp.allclose(y, y_ref, atol=atol, rtol=rtol), (tag, err)


if __name__ == "__main__":
    key = jax.random.PRNGKey(0)
    ks = jax.random.split(key, 10)

    B, L, C_in, C_out = 2, 16, 8, 16
    x = jax.random.normal(ks[0], (B, L, C_in), dtype=jnp.float32)

    # 1) module defaults: kernel_size=1 (pointwise conv, no halo / no repack)
    mod = Conv1DPallas(C_in, C_out, key=ks[1])
    y = jax.block_until_ready(mod(x))
    _check(y, _reference(x, mod.weight, mod.bias, 1, 0, 1), 1e-3, 1e-3, "k1")

    # 2) kernel_size=3, padding=1 (single tile, halo within padded tail)
    mod = Conv1DPallas(C_in, C_out, kernel_size=3, padding=1, key=ks[2])
    y = jax.block_until_ready(mod(x))
    _check(y, _reference(x, mod.weight, mod.bias, 1, 1, 1), 1e-3, 1e-3, "k3")

    # 3) long sequence (exercises L tiling + cross-tile halo)
    L2 = 3000
    x2 = jax.random.normal(ks[3], (B, L2, C_in), dtype=jnp.float32)
    mod = Conv1DPallas(C_in, C_out, kernel_size=3, padding=1, key=ks[4])
    y = jax.block_until_ready(mod(x2))
    _check(y, _reference(x2, mod.weight, mod.bias, 1, 1, 1), 1e-3, 1e-3, "long")

    # 4) stride=2, dilation=2, padding=2 (polyphase path, unit-stride tap slices)
    L3, C_out3 = 64, 32
    x3 = jax.random.normal(ks[5], (B, L3, C_in), dtype=jnp.float32)
    mod = Conv1DPallas(C_in, C_out3, kernel_size=3, stride=2, padding=2,
                       dilation=2, key=ks[6])
    y = jax.block_until_ready(mod(x3))
    _check(y, _reference(x3, mod.weight, mod.bias, 2, 2, 2), 1e-3, 1e-3, "stride")

    # 5) bf16 compute path (f32 accumulation) -- looser tolerance expected
    mod = Conv1DPallas(C_in, C_out, kernel_size=3, padding=1, key=ks[7],
                       compute_dtype=jnp.bfloat16)
    y = jax.block_until_ready(mod(x))
    _check(y, _reference(x, mod.weight, mod.bias, 1, 1, 1), 5e-2, 5e-2, "bf16")

    print("KERNEL_OK")
</pallas_src>

<mosaic_0001>
module attributes {stable_mosaic.version = 11 : i64} {
  func.func @kernel(%arg0: i32, %arg1: i32, %arg2: memref<1x16x8xf32, #tpu.memory_space<vmem>>, %arg3: memref<8x128xf32, #tpu.memory_space<vmem>>, %arg4: memref<1x128xf32, #tpu.memory_space<vmem>>, %arg5: memref<1x16x128xf32, #tpu.memory_space<vmem>>) attributes {dimension_semantics = [#tpu.dimension_semantics<parallel>, #tpu.dimension_semantics<parallel>], iteration_bounds = array<i64: 2, 1>, scalar_prefetch = 0 : i64, scratch_operands = 0 : i64, tpu.core_type = #tpu.core_type<tc>, window_params = [{transform_indices = @transform_0, window_bounds = array<i64: 1, 16, 8>}, {pipeline_mode = #tpu.pipeline_mode<synchronous>, transform_indices = @transform_1, window_bounds = array<i64: 8, 128>}, {pipeline_mode = #tpu.pipeline_mode<synchronous>, transform_indices = @transform_2, window_bounds = array<i64: 1, 128>}, {transform_indices = @transform_3, window_bounds = array<i64: 1, 16, 128>}]} {
    %c0 = arith.constant 0 : index
    %c0_0 = arith.constant 0 : index
    %c0_1 = arith.constant 0 : index
    %0 = vector.load %arg2[%c0, %c0_0, %c0_1] : memref<1x16x8xf32, #tpu.memory_space<vmem>>, vector<1x16x8xf32>
    %1 = vector.shape_cast %0 : vector<1x16x8xf32> to vector<16x8xf32>
    %c0_2 = arith.constant 0 : index
    %c0_3 = arith.constant 0 : index
    %2 = vector.load %arg3[%c0_2, %c0_3] : memref<8x128xf32, #tpu.memory_space<vmem>>, vector<8x128xf32>
    %cst = arith.constant dense<0.000000e+00> : vector<16x128xf32>
    %3 = tpu.matmul %1, %2, %cst {dimension_numbers = #tpu.dot_dimension_numbers<[1], [0], [0], [1], [0, 0, 1, 1], [], []>} : vector<16x8xf32>, vector<8x128xf32>, vector<16x128xf32> -> vector<16x128xf32>
    %c0_4 = arith.constant 0 : index
    %c0_5 = arith.constant 0 : index
    %4 = vector.load %arg4[%c0_4, %c0_5] : memref<1x128xf32, #tpu.memory_space<vmem>>, vector<1x128xf32>
    %5 = vector.broadcast %4 : vector<1x128xf32> to vector<16x128xf32>
    %6 = arith.addf %3, %5 : vector<16x128xf32>
    %c0_6 = arith.constant 0 : index
    %c0_7 = arith.constant 0 : index
    %c0_8 = arith.constant 0 : index
    %7 = vector.load %arg5[%c0_6, %c0_7, %c0_8] : memref<1x16x128xf32, #tpu.memory_space<vmem>>, vector<1x16x128xf32>
    %8 = vector.shape_cast %7 : vector<1x16x128xf32> to vector<16x128xf32>
    %9 = vector.shape_cast %6 : vector<16x128xf32> to vector<1x16x128xf32>
    tpu.vector_store %arg5[%c0_6, %c0_7, %c0_8], %9 {strides = array<i32>} : memref<1x16x128xf32, #tpu.memory_space<vmem>>, vector<1x16x128xf32>,
    return
  }
  func.func @transform_0(%arg0: i32, %arg1: i32) -> (i32, i32, i32) {
    %c0_i32 = arith.constant 0 : i32
    %c0_i32_0 = arith.constant 0 : i32
    return %arg0, %arg1, %c0_i32 : i32, i32, i32
  }
  func.func @transform_1(%arg0: i32, %arg1: i32) -> (i32, i32) {
    %c0_i32 = arith.constant 0 : i32
    %c0_i32_0 = arith.constant 0 : i32
    %c0_i32_1 = arith.constant 0 : i32
    return %c0_i32, %c0_i32_0 : i32, i32
  }
  func.func @transform_2(%arg0: i32, %arg1: i32) -> (i32, i32) {
    %c0_i32 = arith.constant 0 : i32
    %c0_i32_0 = arith.constant 0 : i32
    %c0_i32_1 = arith.constant 0 : i32
    return %c0_i32, %c0_i32_0 : i32, i32
  }
  func.func @transform_3(%arg0: i32, %arg1: i32) -> (i32, i32, i32) {
    %c0_i32 = arith.constant 0 : i32
    %c0_i32_0 = arith.constant 0 : i32
    return %arg0, %arg1, %c0_i32 : i32, i32, i32
  }
}

</mosaic_0001>

<bundles_post_ra>
// kernel: tpu_custom_call.1
= control target key start
LH: loop header
LB: loop body
LE: loop exit
PB: predicated region body
PF: predicated region fallthrough
CT: control target
= control target key end

     0   :  { %8 = vsyncpa [#allocation3], 0  ;;  %s617_s0 = inlined_call_operand.vmem [shape: f32[2,16,8], index: 0, kind: input, shape index: {}]   ;;  %s618_s1 = inlined_call_operand.vmem [shape: f32[8,128], index: 1, kind: input, shape index: {}]   ;;  %s619_s2 = inlined_call_operand.vmem [shape: f32[1,128], index: 2, kind: input, shape index: {}]   ;;  %s620_s3 = inlined_call_operand.hbm [shape: f32[2,16,128], index: 3, kind: output, shape index: {}]  }
   0x1   :  { %10 = vsyncpa [#allocation3 + $0x1], 0  ;;  %s514_s12 = smov 0   ;;  %s516_s13 = smov 0  }
   0x2   :  { %s518_s14 = smov 0   ;;  %s520_s15 = smov 0  }
   0x3   :  { %s522_s16 = smov 0   ;;  %s524_s17 = smov 0  }
   0x4 LB: > { %s336_s18 = sadd.s32 4294967295, %s490_s17   ;;  %s337_s19 = sadd.s32 4294967294, %s490_s17   ;;  %s490_s17 = sphi %s524_s17, %s16_s17   ;;  %s486_s16 = sphi %s522_s16, %s627_s16   ;;  %s482_s15 = sphi %s520_s15, %s626_s15   ;;  %s478_s14 = sphi %s518_s14, %s625_s14   ;;  %s474_s13 = sphi %s516_s13, %s624_s13   ;;  %s470_s12 = sphi %s514_s12, %s623_s12  }
   0x5   : > { %s28_s20 = sadd.s32 1, %s486_s16  ;;  %s107_s21 = sadd.s32 1, %s478_s14 }
   0x6   : > { %p30_p0 = scmp.ge.s32.totalorder %s28_s20, 2  ;;  %p117_p1 = scmp.ne.s32.totalorder %s478_s14, %s474_s13 }
   0x7   : > { %p118_p2 = scmp.eq.s32.totalorder %s336_s18, 1  ;;  %p123_p3 = scmp.ne.s32.totalorder %s474_s13, %s470_s12 }
   0x8   : > { %s629_s20 = smov (%p30_p0, %s28_s20), 0  ;;  %p124_p5 = scmp.eq.s32.totalorder %s337_s19, 1 }
   0x9   : > { %p554_p4 = por %p118_p2, %p117_p1  ;;  %s102_s23 = ssub.s32 %s486_s16, %s629_s20 }
   0xa   : > { %p340_p6 = scmp.ge.s32.totalorder %s490_s17, 1  ;;  %p105_p7 = scmp.eq.s32.totalorder %s102_s23, 0 }
   0xb   : > { %p561_p8 = por %p124_p5, %p123_p3  ;;  %p161_p9 = scmp.lt.s32.totalorder %s490_s17, 3 }
   0xc   : > { %s567_s25 = scalar_select %p105_p7, %s478_s14, %s107_s21  }
   0xd   : > { %p162_p10 = pnand %p340_p6, %p161_p9 }
   0xe   : > { %p190_p11 = scmp.lt.s32.totalorder (!%p162_p10), %s482_s15, 1  ;;  %s186_s6 = sand.u32 (!%p162_p10), 1, %s474_s13  }
   0xf   : > { %165 = sbr.rel (%p162_p10) target bundleno = 158 (0x9e), region = 32  ;;  %s341_s7 = sshll.u32 (!%p162_p10), %s186_s6, 4 }
  0x10   : > { %s352_s8 = sshll.u32 (!%p162_p10), %s482_s15, 4  ;;  %s188_s21 = scalar_lea.vmem (!%p162_p10), [#allocation2], %s341_s7 }
  0x11   : > { %s253_s11 = scalar_lea.hbm (!%p162_p10), %s620_s3, %s352_s8  ;;  %s254_s23 = sshll.u32 (!%p162_p10), %s188_s21, 4  ;;  %s255_s23 = int_to_ptr.vmem [resolvable:$true] %s254_s23 }
  0x12   : > { %s256_s26 = sshll.u32 (!%p162_p10), %s253_s11, 4  ;;  %s432_s4 = scalar_lea.hbm (!%p162_p10), %s620_s3, 32  ;;  %s257_s26 = int_to_ptr.hbm [resolvable:$true] %s256_s26 }
  0x13   : > { %s426_s27 = sshra.s32 (!%p162_p10), %s257_s26, 4  ;;  %s427_s27 = int_to_ptr.hbm [resolvable:$true] %s426_s27 }
  0x14   : > { %v202_v0 = vld [vmem:[%s618_s1] sm:$0xff]  ;;  %s191_s28 = scalar_select %p190_p11, %s482_s15, 1  ;;  %vm207_vm0 = vcmask 64512  }
  0x15   : > { %229 = vmatpush.msra.mxu0 %v202_v0  ;;  %353 = vmatpush.msra.mxu1 %v202_v0  ;;  %v411_v3 = vld [vmem:[%s619_s2] ss:$0 sm:$0xff]  ;;  %s240_s15 = scalar_lea.sflag [#allocation3], %s186_s6  ;;  %p433_p1 = scmp.lt.s32.totalorder %s427_s27, %s620_s3 }
  0x16   : > { %s351_s29 = sshll.u32 %s191_s28, 4  ;;  %s428_s28 = scalar_lea.hbm %s427_s27, 16 }
  0x17   : > { %s197_s5 = scalar_lea.vmem %s617_s0, %s351_s29  ;;  %p429_p12 = scmp.ne.s32.totalorder %s427_s27, %s428_s28 }
  0x18   : > { %v200_v1 = vld [vmem:[%s197_s5] sm:$0xff]  ;;  %v201_v2 = vld [vmem:[%s197_s5 + $0x8] sm:$0xff]  ;;  %p434_p2 = scmp.lt.s32.totalorder %s432_s4, %s428_s28 }
  0x19   : > { %344 = vmatmul.msk.f32.vlgmr.msra.gmra.mxu0 %vm207_vm0, %v200_v1  ;;  %345 = vmatmul.msk.f32.vlgmr.msra.gmra.mxu1 %vm207_vm0, %v201_v2  ;;  %p430_p13 = pnand %p429_p12, %p554_p4 }
  0x1a   : > { %p435_p3 = por %p434_p2, %p433_p1 }
  0x1b   : > { %p431_p0 = pneg %p430_p13 }
  0x1d   : > { %p436_p5 = pnand %p435_p3, %p431_p0 }
  0x96   : > { %v231_v4 = vpop.f32.mrf.mxu0  ;;  %v234_v5 = vpop.f32.mrf.mxu1 }
  0x97   : > { %v232_v6 = vadd.f32 %v411_v3, %v231_v4  ;;  %v235_v7 = vadd.f32 %v411_v3, %v234_v5 }
  0x99   : > { %237 = vst [vmem:[%s188_s21] sm:$0xff] %v232_v6 }
  0x9a   : > { %238 = vst [vmem:[%s188_s21 + $0x8] sm:$0xff] %v235_v7 }
  0x9b   : > { %439 = shalt.err (!%p436_p5)
}
  0x9c   : > { %s492_s6 = smov 128   ;;  %s493_s8 = smov 8  }
  0x9d   : > { %354 = dma.vmem_to_hbm [thread:$0]  (%p554_p4), %s255_s23, 256, %s257_s26, %s240_s15, %s492_s6, %s492_s6, %s493_s8  }
  0x9e PF: > { %p360_p6 = scmp.ge.s32.totalorder %s490_s17, 2  ;;  %s271_s9 = sand.u32 1, %s470_s12  }
  0x9f   : > { %s272_s10 = scalar_lea.sflag [#allocation3], %s271_s9 }
  0xa0   : > { %p357_p7 = pnand %p360_p6, %p561_p8 }
  0xa2   : > { %p358_p9 = pneg %p357_p7 }
  0xa4   : > { %465 = dma.done.wait (%p358_p9), %s272_s10, 256  }
  0xa5   : > { %467 = vsyncadd (%p358_p9), %s272_s10, 4294967040  ;;  %s16_s17 = sadd.s32 1, %s490_s17   ;;  %s623_s12 = smov %s474_s13 }
  0xa6   : > { %p13_p10 = scmp.ge.s32.totalorder %s16_s17, 4   ;;  %s624_s13 = smov %s478_s14 }
  0xa7   : > { %s625_s14 = smov %s567_s25  ;;  %s626_s15 = smov %s486_s16 }
  0xa8   : > { %s627_s16 = smov %s629_s20  ;;  %15 = sbr.rel (!%p13_p10) target bundleno = 4 (0x4), region = 67 }
  0xad   :  { %278 = vsyncpa [#allocation3], 1 }
  0xae   :  { %280 = vsyncpa [#allocation3 + $0x1], 1 }

</bundles_post_ra>
